<compile_context>
chip_gen: v6e
topology: v6e:2x2x1
jax: 0.10.0
libtpu: 0.0.40
codegen_flags: <defaults>
</compile_context>

<pallas_src>
import functools

import jax
import jax.numpy as jnp
from jax.experimental import pallas as pl
from jax.experimental.pallas import tpu as pltpu


def _log_sigmoid(x):
    # numerically stable logsigmoid
    return jnp.minimum(x, 0.0) - jnp.log(1.0 + jnp.exp(-jnp.abs(x)))


def skipgram_kernel(u_idx_ref, v_idx_ref,        # scalar-prefetch (SMEM) index tables
                    u_emb_ref, v_emb_ref,        # VMEM-resident [V, D] embedding tables
                    loss_ref,                    # (1, 1) f32 output
                    usum_ref, vrow_ref, acc_ref,  # VMEM scratch
                    *, n_pos, n_rows, inv_div, inv_norm):
    TB, D = usum_ref.shape                       # batch tile, embedding dim (static)
    W = u_idx_ref.shape[1]                       # context window (static)
    tile_id = pl.program_id(0)
    row0 = tile_id * TB

    @pl.when(tile_id == 0)
    def _init():
        acc_ref[...] = jnp.zeros_like(acc_ref)

    # ---- index-driven gather: window-sum of u rows + single v row per pair --------
    # Indices are assumed in [0, V); OOB indices are NOT checked (VMEM dynamic slice).
    for b in range(TB):                          # static unroll (TB is small)
        r = row0 + b
        row = u_emb_ref[pl.ds(u_idx_ref[r, 0], 1), :]            # [1, D]
        for w in range(1, W):
            row = row + u_emb_ref[pl.ds(u_idx_ref[r, w], 1), :]
        usum_ref[pl.ds(b, 1), :] = row
        vrow_ref[pl.ds(b, 1), :] = v_emb_ref[pl.ds(v_idx_ref[r, 0], 1), :]

    # ---- vectorized score / logsigmoid over the whole tile -------------------------
    score = jnp.sum(usum_ref[...] * vrow_ref[...], axis=1, keepdims=True) * inv_div  # [TB,1]
    ridx = row0 + jax.lax.broadcasted_iota(jnp.int32, (TB, 1), 0)  # global row index
    sign = jnp.where(ridx < n_pos, 1.0, -1.0)                      # +1 pos, -1 neg
    mask = (ridx < n_rows).astype(jnp.float32)                     # 0 for padding rows
    acc_ref[...] += jnp.sum(mask * _log_sigmoid(sign * score), axis=0, keepdims=True)

    @pl.when(tile_id == pl.num_programs(0) - 1)
    def _finish():
        loss_ref[...] = -acc_ref[...] * inv_norm


def skipgram_loss(pos_u, pos_v, neg_u, neg_v, u_emb, v_emb, *, tile=8):
    """Pallas SkipGram forward.  pos_u:[Bp,W], pos_v:[Bp], neg_u:[Bn,W], neg_v:[Bn]
    (int); u_emb/v_emb:[V,D] f32.  Returns the scalar loss (f32)."""
    pos_u = jnp.asarray(pos_u, jnp.int32)
    neg_u = jnp.asarray(neg_u, jnp.int32)
    pos_v = jnp.asarray(pos_v, jnp.int32).reshape(-1, 1)
    neg_v = jnp.asarray(neg_v, jnp.int32).reshape(-1, 1)
    u_emb = jnp.asarray(u_emb, jnp.float32)
    v_emb = jnp.asarray(v_emb, jnp.float32)

    Bp, W = pos_u.shape
    Bn, Wn = neg_u.shape
    assert Wn == W, "fused kernel assumes equal context window for pos/neg batches"
    V, D = u_emb.shape

    # Fuse pos/neg into one batch, pad rows to a multiple of the tile size.
    n_rows = Bp + Bn
    n_tiles = pl.cdiv(n_rows, tile)
    b_pad = n_tiles * tile
    u_idx = jnp.zeros((b_pad, W), jnp.int32).at[:Bp].set(pos_u).at[Bp:n_rows].set(neg_u)
    v_idx = jnp.zeros((b_pad, 1), jnp.int32).at[:Bp].set(pos_v).at[Bp:n_rows].set(neg_v)

    # divisor mirrors torch: len(pos_u[0][1:]) == W-1 (W==1 -> inf, same as a /0 there)
    inv_div = (1.0 / float(W - 1)) if W > 1 else float("inf")
    inv_norm = 1.0 / float(Bp)                   # final  loss / len(pos_v)

    table_bytes = 2 * V * D * 4
    vmem_limit = min(table_bytes + (16 << 20), 48 << 20)

    kernel = functools.partial(
        skipgram_kernel,
        n_pos=Bp, n_rows=n_rows, inv_div=inv_div, inv_norm=inv_norm,
    )

    out = pl.pallas_call(
        kernel,
        out_shape=jax.ShapeDtypeStruct((1, 1), jnp.float32),
        grid_spec=pltpu.PrefetchScalarGridSpec(
            num_scalar_prefetch=2,               # u_idx, v_idx -> SMEM
            grid=(n_tiles,),
            in_specs=[
                pl.BlockSpec((V, D), lambda i, ui, vi: (0, 0)),   # u table, resident
                pl.BlockSpec((V, D), lambda i, ui, vi: (0, 0)),   # v table, resident
            ],
            out_specs=pl.BlockSpec((1, 1), lambda i, ui, vi: (0, 0)),
            scratch_shapes=[
                pltpu.VMEM((tile, D), jnp.float32),   # window-summed u rows
                pltpu.VMEM((tile, D), jnp.float32),   # gathered v rows
                pltpu.VMEM((1, 1), jnp.float32),      # running loss accumulator
            ],
        ),
        compiler_params=pltpu.CompilerParams(
            dimension_semantics=("arbitrary",),       # scalar loss accumulates over tiles
            vmem_limit_bytes=vmem_limit,
        ),
    )(u_idx, v_idx, u_emb, v_emb)
    return out[0, 0]


def skipgram_ref(pos_u, pos_v, neg_u, neg_v, u_emb, v_emb):
    """Pure-JAX reference mirroring the PyTorch forward exactly."""
    div = pos_u.shape[1] - 1                     # len(pos_u[0][1:])
    embed_pos_u = u_emb[pos_u]                   # [Bp, W, D]
    embed_pos_v = v_emb[pos_v]                   # [Bp, D]
    pos_input_word = jnp.sum(embed_pos_u, axis=1) / div
    score = jnp.sum(pos_input_word * embed_pos_v, axis=1)
    log_target = jax.nn.log_sigmoid(score)
    embed_neg_u = u_emb[neg_u]
    embed_neg_v = v_emb[neg_v]
    neg_input_word = jnp.sum(embed_neg_u, axis=1) / div
    neg_score = jnp.sum(neg_input_word * embed_neg_v, axis=1)
    sum_log_sampled = jax.nn.log_sigmoid(-neg_score)
    loss = -(log_target.sum() + sum_log_sampled.sum())
    return loss / pos_v.shape[0]


if __name__ == "__main__":
    V, D = 256, 64       # vocab_size, embedding_dim
    Bp, W = 8, 5         # positive pairs, context window
    Bn = 12              # negative samples (different from Bp to exercise padding/mask)

    key = jax.random.PRNGKey(0)
    k1, k2, k3, k4, k5, k6 = jax.random.split(key, 6)

    initrange = 0.5 / D
    u_emb = jax.random.uniform(k1, (V, D), jnp.float32, -initrange, initrange)
    # NOTE: the torch module zero-inits the v embedding (uniform_(-0, 0)); nonzero
    # values here keep the numerical check non-degenerate.  Use jnp.zeros((V, D)) to
    # match that init exactly.
    v_emb = jax.random.uniform(k2, (V, D), jnp.float32, -initrange, initrange)

    pos_u = jax.random.randint(k3, (Bp, W), 0, V, jnp.int32)
    pos_v = jax.random.randint(k4, (Bp,), 0, V, jnp.int32)
    neg_u = jax.random.randint(k5, (Bn, W), 0, V, jnp.int32)
    neg_v = jax.random.randint(k6, (Bn,), 0, V, jnp.int32)

    loss = skipgram_loss(pos_u, pos_v, neg_u, neg_v, u_emb, v_emb)
    jax.block_until_ready(loss)

    ref = skipgram_ref(pos_u, pos_v, neg_u, neg_v, u_emb, v_emb)
    assert jnp.allclose(loss, ref, atol=1e-5, rtol=1e-5), (float(loss), float(ref))
    print("KERNEL_OK")
</pallas_src>

<mosaic_0001>
module attributes {stable_mosaic.version = 11 : i64} {
  func.func @skipgram_kernel(%arg0: i32, %arg1: memref<24x5xi32, #tpu.memory_space<smem>>, %arg2: memref<24x1xi32, #tpu.memory_space<smem>>, %arg3: memref<256x64xf32, #tpu.memory_space<vmem>>, %arg4: memref<256x64xf32, #tpu.memory_space<vmem>>, %arg5: memref<1x1xf32, #tpu.memory_space<vmem>>, %arg6: memref<8x64xf32, #tpu.memory_space<vmem>>, %arg7: memref<8x64xf32, #tpu.memory_space<vmem>>, %arg8: memref<1x1xf32, #tpu.memory_space<vmem>>) attributes {dimension_semantics = [#tpu.dimension_semantics<arbitrary>], iteration_bounds = array<i64: 3>, scalar_prefetch = 2 : i64, scratch_operands = 3 : i64, tpu.core_type = #tpu.core_type<tc>, window_params = [{pipeline_mode = #tpu.pipeline_mode<synchronous>, transform_indices = @transform_0, window_bounds = array<i64: 256, 64>}, {pipeline_mode = #tpu.pipeline_mode<synchronous>, transform_indices = @transform_1, window_bounds = array<i64: 256, 64>}, {pipeline_mode = #tpu.pipeline_mode<synchronous>, transform_indices = @transform_2, window_bounds = array<i64: 1, 1>}]} {
    %c8_i32 = arith.constant 8 : i32
    %0 = arith.muli %arg0, %c8_i32 : i32
    %c0_i32 = arith.constant 0 : i32
    %1 = arith.cmpi eq, %arg0, %c0_i32 : i32
    %2 = arith.extui %1 : i1 to i32
    %c0_i32_0 = arith.constant 0 : i32
    %3 = arith.cmpi ne, %2, %c0_i32_0 : i32
    scf.if %3 {
      %cst_140 = arith.constant 0.000000e+00 : f32
      %291 = vector.broadcast %cst_140 : f32 to vector<1x1xf32>
      %c0_141 = arith.constant 0 : index
      %c0_142 = arith.constant 0 : index
      %292 = vector.load %arg8[%c0_141, %c0_142] : memref<1x1xf32, #tpu.memory_space<vmem>>, vector<1x1xf32>
      tpu.vector_store %arg8[%c0_141, %c0_142], %291 {strides = array<i32>} : memref<1x1xf32, #tpu.memory_space<vmem>>, vector<1x1xf32>,
    } else {
    }
    %c0_i32_1 = arith.constant 0 : i32
    %4 = arith.addi %0, %c0_i32_1 : i32
    %5 = arith.index_cast %4 : i32 to index
    %c0 = arith.constant 0 : index
    %6 = memref.load %arg1[%5, %c0] : memref<24x5xi32, #tpu.memory_space<smem>>
    %7 = arith.index_cast %6 : i32 to index
    %c0_2 = arith.constant 0 : index
    %8 = vector.load %arg3[%7, %c0_2] : memref<256x64xf32, #tpu.memory_space<vmem>>, vector<1x64xf32>
    %9 = arith.index_cast %4 : i32 to index
    %c1 = arith.constant 1 : index
    %10 = memref.load %arg1[%9, %c1] : memref<24x5xi32, #tpu.memory_space<smem>>
    %11 = arith.index_cast %10 : i32 to index
    %c0_3 = arith.constant 0 : index
    %12 = vector.load %arg3[%11, %c0_3] : memref<256x64xf32, #tpu.memory_space<vmem>>, vector<1x64xf32>
    %13 = arith.addf %8, %12 : vector<1x64xf32>
    %14 = arith.index_cast %4 : i32 to index
    %c2 = arith.constant 2 : index
    %15 = memref.load %arg1[%14, %c2] : memref<24x5xi32, #tpu.memory_space<smem>>
    %16 = arith.index_cast %15 : i32 to index
    %c0_4 = arith.constant 0 : index
    %17 = vector.load %arg3[%16, %c0_4] : memref<256x64xf32, #tpu.memory_space<vmem>>, vector<1x64xf32>
    %18 = arith.addf %13, %17 : vector<1x64xf32>
    %19 = arith.index_cast %4 : i32 to index
    %c3 = arith.constant 3 : index
    %20 = memref.load %arg1[%19, %c3] : memref<24x5xi32, #tpu.memory_space<smem>>
    %21 = arith.index_cast %20 : i32 to index
    %c0_5 = arith.constant 0 : index
    %22 = vector.load %arg3[%21, %c0_5] : memref<256x64xf32, #tpu.memory_space<vmem>>, vector<1x64xf32>
    %23 = arith.addf %18, %22 : vector<1x64xf32>
    %24 = arith.index_cast %4 : i32 to index
    %c4 = arith.constant 4 : index
    %25 = memref.load %arg1[%24, %c4] : memref<24x5xi32, #tpu.memory_space<smem>>
    %26 = arith.index_cast %25 : i32 to index
    %c0_6 = arith.constant 0 : index
    %27 = vector.load %arg3[%26, %c0_6] : memref<256x64xf32, #tpu.memory_space<vmem>>, vector<1x64xf32>
    %28 = arith.addf %23, %27 : vector<1x64xf32>
    %c0_7 = arith.constant 0 : index
    %c0_8 = arith.constant 0 : index
    %29 = vector.load %arg6[%c0_7, %c0_8] : memref<8x64xf32, #tpu.memory_space<vmem>>, vector<1x64xf32>
    tpu.vector_store %arg6[%c0_7, %c0_8], %28 {strides = array<i32>} : memref<8x64xf32, #tpu.memory_space<vmem>>, vector<1x64xf32>,
    %30 = arith.index_cast %4 : i32 to index
    %c0_9 = arith.constant 0 : index
    %31 = memref.load %arg2[%30, %c0_9] : memref<24x1xi32, #tpu.memory_space<smem>>
    %32 = arith.index_cast %31 : i32 to index
    %c0_10 = arith.constant 0 : index
    %33 = vector.load %arg4[%32, %c0_10] : memref<256x64xf32, #tpu.memory_space<vmem>>, vector<1x64xf32>
    %c0_11 = arith.constant 0 : index
    %c0_12 = arith.constant 0 : index
    %34 = vector.load %arg7[%c0_11, %c0_12] : memref<8x64xf32, #tpu.memory_space<vmem>>, vector<1x64xf32>
    tpu.vector_store %arg7[%c0_11, %c0_12], %33 {strides = array<i32>} : memref<8x64xf32, #tpu.memory_space<vmem>>, vector<1x64xf32>,
    %c1_i32 = arith.constant 1 : i32
    %35 = arith.addi %0, %c1_i32 : i32
    %36 = arith.index_cast %35 : i32 to index
    %c0_13 = arith.constant 0 : index
    %37 = memref.load %arg1[%36, %c0_13] : memref<24x5xi32, #tpu.memory_space<smem>>
    %38 = arith.index_cast %37 : i32 to index
    %c0_14 = arith.constant 0 : index
    %39 = vector.load %arg3[%38, %c0_14] : memref<256x64xf32, #tpu.memory_space<vmem>>, vector<1x64xf32>
    %40 = arith.index_cast %35 : i32 to index
    %c1_15 = arith.constant 1 : index
    %41 = memref.load %arg1[%40, %c1_15] : memref<24x5xi32, #tpu.memory_space<smem>>
    %42 = arith.index_cast %41 : i32 to index
    %c0_16 = arith.constant 0 : index
    %43 = vector.load %arg3[%42, %c0_16] : memref<256x64xf32, #tpu.memory_space<vmem>>, vector<1x64xf32>
    %44 = arith.addf %39, %43 : vector<1x64xf32>
    %45 = arith.index_cast %35 : i32 to index
    %c2_17 = arith.constant 2 : index
    %46 = memref.load %arg1[%45, %c2_17] : memref<24x5xi32, #tpu.memory_space<smem>>
    %47 = arith.index_cast %46 : i32 to index
    %c0_18 = arith.constant 0 : index
    %48 = vector.load %arg3[%47, %c0_18] : memref<256x64xf32, #tpu.memory_space<vmem>>, vector<1x64xf32>
    %49 = arith.addf %44, %48 : vector<1x64xf32>
    %50 = arith.index_cast %35 : i32 to index
    %c3_19 = arith.constant 3 : index
    %51 = memref.load %arg1[%50, %c3_19] : memref<24x5xi32, #tpu.memory_space<smem>>
    %52 = arith.index_cast %51 : i32 to index
    %c0_20 = arith.constant 0 : index
    %53 = vector.load %arg3[%52, %c0_20] : memref<256x64xf32, #tpu.memory_space<vmem>>, vector<1x64xf32>
    %54 = arith.addf %49, %53 : vector<1x64xf32>
    %55 = arith.index_cast %35 : i32 to index
    %c4_21 = arith.constant 4 : index
    %56 = memref.load %arg1[%55, %c4_21] : memref<24x5xi32, #tpu.memory_space<smem>>
    %57 = arith.index_cast %56 : i32 to index
    %c0_22 = arith.constant 0 : index
    %58 = vector.load %arg3[%57, %c0_22] : memref<256x64xf32, #tpu.memory_space<vmem>>, vector<1x64xf32>
    %59 = arith.addf %54, %58 : vector<1x64xf32>
    %c1_23 = arith.constant 1 : index
    %c0_24 = arith.constant 0 : index
    %60 = vector.load %arg6[%c1_23, %c0_24] : memref<8x64xf32, #tpu.memory_space<vmem>>, vector<1x64xf32>
    tpu.vector_store %arg6[%c1_23, %c0_24], %59 {strides = array<i32>} : memref<8x64xf32, #tpu.memory_space<vmem>>, vector<1x64xf32>,
    %61 = arith.index_cast %35 : i32 to index
    %c0_25 = arith.constant 0 : index
    %62 = memref.load %arg2[%61, %c0_25] : memref<24x1xi32, #tpu.memory_space<smem>>
    %63 = arith.index_cast %62 : i32 to index
    %c0_26 = arith.constant 0 : index
    %64 = vector.load %arg4[%63, %c0_26] : memref<256x64xf32, #tpu.memory_space<vmem>>, vector<1x64xf32>
    %c1_27 = arith.constant 1 : index
    %c0_28 = arith.constant 0 : index
    %65 = vector.load %arg7[%c1_27, %c0_28] : memref<8x64xf32, #tpu.memory_space<vmem>>, vector<1x64xf32>
    tpu.vector_store %arg7[%c1_27, %c0_28], %64 {strides = array<i32>} : memref<8x64xf32, #tpu.memory_space<vmem>>, vector<1x64xf32>,
    %c2_i32 = arith.constant 2 : i32
    %66 = arith.addi %0, %c2_i32 : i32
    %67 = arith.index_cast %66 : i32 to index
    %c0_29 = arith.constant 0 : index
    %68 = memref.load %arg1[%67, %c0_29] : memref<24x5xi32, #tpu.memory_space<smem>>
    %69 = arith.index_cast %68 : i32 to index
    %c0_30 = arith.constant 0 : index
    %70 = vector.load %arg3[%69, %c0_30] : memref<256x64xf32, #tpu.memory_space<vmem>>, vector<1x64xf32>
    %71 = arith.index_cast %66 : i32 to index
    %c1_31 = arith.constant 1 : index
    %72 = memref.load %arg1[%71, %c1_31] : memref<24x5xi32, #tpu.memory_space<smem>>
    %73 = arith.index_cast %72 : i32 to index
    %c0_32 = arith.constant 0 : index
    %74 = vector.load %arg3[%73, %c0_32] : memref<256x64xf32, #tpu.memory_space<vmem>>, vector<1x64xf32>
    %75 = arith.addf %70, %74 : vector<1x64xf32>
    %76 = arith.index_cast %66 : i32 to index
    %c2_33 = arith.constant 2 : index
    %77 = memref.load %arg1[%76, %c2_33] : memref<24x5xi32, #tpu.memory_space<smem>>
    %78 = arith.index_cast %77 : i32 to index
    %c0_34 = arith.constant 0 : index
    %79 = vector.load %arg3[%78, %c0_34] : memref<256x64xf32, #tpu.memory_space<vmem>>, vector<1x64xf32>
    %80 = arith.addf %75, %79 : vector<1x64xf32>
    %81 = arith.index_cast %66 : i32 to index
    %c3_35 = arith.constant 3 : index
    %82 = memref.load %arg1[%81, %c3_35] : memref<24x5xi32, #tpu.memory_space<smem>>
    %83 = arith.index_cast %82 : i32 to index
    %c0_36 = arith.constant 0 : index
    %84 = vector.load %arg3[%83, %c0_36] : memref<256x64xf32, #tpu.memory_space<vmem>>, vector<1x64xf32>
    %85 = arith.addf %80, %84 : vector<1x64xf32>
    %86 = arith.index_cast %66 : i32 to index
    %c4_37 = arith.constant 4 : index
    %87 = memref.load %arg1[%86, %c4_37] : memref<24x5xi32, #tpu.memory_space<smem>>
    %88 = arith.index_cast %87 : i32 to index
    %c0_38 = arith.constant 0 : index
    %89 = vector.load %arg3[%88, %c0_38] : memref<256x64xf32, #tpu.memory_space<vmem>>, vector<1x64xf32>
    %90 = arith.addf %85, %89 : vector<1x64xf32>
    %c2_39 = arith.constant 2 : index
    %c0_40 = arith.constant 0 : index
    %91 = vector.load %arg6[%c2_39, %c0_40] : memref<8x64xf32, #tpu.memory_space<vmem>>, vector<1x64xf32>
    tpu.vector_store %arg6[%c2_39, %c0_40], %90 {strides = array<i32>} : memref<8x64xf32, #tpu.memory_space<vmem>>, vector<1x64xf32>,
    %92 = arith.index_cast %66 : i32 to index
    %c0_41 = arith.constant 0 : index
    %93 = memref.load %arg2[%92, %c0_41] : memref<24x1xi32, #tpu.memory_space<smem>>
    %94 = arith.index_cast %93 : i32 to index
    %c0_42 = arith.constant 0 : index
    %95 = vector.load %arg4[%94, %c0_42] : memref<256x64xf32, #tpu.memory_space<vmem>>, vector<1x64xf32>
    %c2_43 = arith.constant 2 : index
    %c0_44 = arith.constant 0 : index
    %96 = vector.load %arg7[%c2_43, %c0_44] : memref<8x64xf32, #tpu.memory_space<vmem>>, vector<1x64xf32>
    tpu.vector_store %arg7[%c2_43, %c0_44], %95 {strides = array<i32>} : memref<8x64xf32, #tpu.memory_space<vmem>>, vector<1x64xf32>,
    %c3_i32 = arith.constant 3 : i32
    %97 = arith.addi %0, %c3_i32 : i32
    %98 = arith.index_cast %97 : i32 to index
    %c0_45 = arith.constant 0 : index
    %99 = memref.load %arg1[%98, %c0_45] : memref<24x5xi32, #tpu.memory_space<smem>>
    %100 = arith.index_cast %99 : i32 to index
    %c0_46 = arith.constant 0 : index
    %101 = vector.load %arg3[%100, %c0_46] : memref<256x64xf32, #tpu.memory_space<vmem>>, vector<1x64xf32>
    %102 = arith.index_cast %97 : i32 to index
    %c1_47 = arith.constant 1 : index
    %103 = memref.load %arg1[%102, %c1_47] : memref<24x5xi32, #tpu.memory_space<smem>>
    %104 = arith.index_cast %103 : i32 to index
    %c0_48 = arith.constant 0 : index
    %105 = vector.load %arg3[%104, %c0_48] : memref<256x64xf32, #tpu.memory_space<vmem>>, vector<1x64xf32>
    %106 = arith.addf %101, %105 : vector<1x64xf32>
    %107 = arith.index_cast %97 : i32 to index
    %c2_49 = arith.constant 2 : index
    %108 = memref.load %arg1[%107, %c2_49] : memref<24x5xi32, #tpu.memory_space<smem>>
    %109 = arith.index_cast %108 : i32 to index
    %c0_50 = arith.constant 0 : index
    %110 = vector.load %arg3[%109, %c0_50] : memref<256x64xf32, #tpu.memory_space<vmem>>, vector<1x64xf32>
    %111 = arith.addf %106, %110 : vector<1x64xf32>
    %112 = arith.index_cast %97 : i32 to index
    %c3_51 = arith.constant 3 : index
    %113 = memref.load %arg1[%112, %c3_51] : memref<24x5xi32, #tpu.memory_space<smem>>
    %114 = arith.index_cast %113 : i32 to index
    %c0_52 = arith.constant 0 : index
    %115 = vector.load %arg3[%114, %c0_52] : memref<256x64xf32, #tpu.memory_space<vmem>>, vector<1x64xf32>
    %116 = arith.addf %111, %115 : vector<1x64xf32>
    %117 = arith.index_cast %97 : i32 to index
    %c4_53 = arith.constant 4 : index
    %118 = memref.load %arg1[%117, %c4_53] : memref<24x5xi32, #tpu.memory_space<smem>>
    %119 = arith.index_cast %118 : i32 to index
    %c0_54 = arith.constant 0 : index
    %120 = vector.load %arg3[%119, %c0_54] : memref<256x64xf32, #tpu.memory_space<vmem>>, vector<1x64xf32>
    %121 = arith.addf %116, %120 : vector<1x64xf32>
    %c3_55 = arith.constant 3 : index
    %c0_56 = arith.constant 0 : index
    %122 = vector.load %arg6[%c3_55, %c0_56] : memref<8x64xf32, #tpu.memory_space<vmem>>, vector<1x64xf32>
    tpu.vector_store %arg6[%c3_55, %c0_56], %121 {strides = array<i32>} : memref<8x64xf32, #tpu.memory_space<vmem>>, vector<1x64xf32>,
    %123 = arith.index_cast %97 : i32 to index
    %c0_57 = arith.constant 0 : index
    %124 = memref.load %arg2[%123, %c0_57] : memref<24x1xi32, #tpu.memory_space<smem>>
    %125 = arith.index_cast %124 : i32 to index
    %c0_58 = arith.constant 0 : index
    %126 = vector.load %arg4[%125, %c0_58] : memref<256x64xf32, #tpu.memory_space<vmem>>, vector<1x64xf32>
    %c3_59 = arith.constant 3 : index
    %c0_60 = arith.constant 0 : index
    %127 = vector.load %arg7[%c3_59, %c0_60] : memref<8x64xf32, #tpu.memory_space<vmem>>, vector<1x64xf32>
    tpu.vector_store %arg7[%c3_59, %c0_60], %126 {strides = array<i32>} : memref<8x64xf32, #tpu.memory_space<vmem>>, vector<1x64xf32>,
    %c4_i32 = arith.constant 4 : i32
    %128 = arith.addi %0, %c4_i32 : i32
    %129 = arith.index_cast %128 : i32 to index
    %c0_61 = arith.constant 0 : index
    %130 = memref.load %arg1[%129, %c0_61] : memref<24x5xi32, #tpu.memory_space<smem>>
    %131 = arith.index_cast %130 : i32 to index
    %c0_62 = arith.constant 0 : index
    %132 = vector.load %arg3[%131, %c0_62] : memref<256x64xf32, #tpu.memory_space<vmem>>, vector<1x64xf32>
    %133 = arith.index_cast %128 : i32 to index
    %c1_63 = arith.constant 1 : index
    %134 = memref.load %arg1[%133, %c1_63] : memref<24x5xi32, #tpu.memory_space<smem>>
    %135 = arith.index_cast %134 : i32 to index
    %c0_64 = arith.constant 0 : index
    %136 = vector.load %arg3[%135, %c0_64] : memref<256x64xf32, #tpu.memory_space<vmem>>, vector<1x64xf32>
    %137 = arith.addf %132, %136 : vector<1x64xf32>
    %138 = arith.index_cast %128 : i32 to index
    %c2_65 = arith.constant 2 : index
    %139 = memref.load %arg1[%138, %c2_65] : memref<24x5xi32, #tpu.memory_space<smem>>
    %140 = arith.index_cast %139 : i32 to index
    %c0_66 = arith.constant 0 : index
    %141 = vector.load %arg3[%140, %c0_66] : memref<256x64xf32, #tpu.memory_space<vmem>>, vector<1x64xf32>
    %142 = arith.addf %137, %141 : vector<1x64xf32>
    %143 = arith.index_cast %128 : i32 to index
    %c3_67 = arith.constant 3 : index
    %144 = memref.load %arg1[%143, %c3_67] : memref<24x5xi32, #tpu.memory_space<smem>>
    %145 = arith.index_cast %144 : i32 to index
    %c0_68 = arith.constant 0 : index
    %146 = vector.load %arg3[%145, %c0_68] : memref<256x64xf32, #tpu.memory_space<vmem>>, vector<1x64xf32>
    %147 = arith.addf %142, %146 : vector<1x64xf32>
    %148 = arith.index_cast %128 : i32 to index
    %c4_69 = arith.constant 4 : index
    %149 = memref.load %arg1[%148, %c4_69] : memref<24x5xi32, #tpu.memory_space<smem>>
    %150 = arith.index_cast %149 : i32 to index
    %c0_70 = arith.constant 0 : index
    %151 = vector.load %arg3[%150, %c0_70] : memref<256x64xf32, #tpu.memory_space<vmem>>, vector<1x64xf32>
    %152 = arith.addf %147, %151 : vector<1x64xf32>
    %c4_71 = arith.constant 4 : index
    %c0_72 = arith.constant 0 : index
    %153 = vector.load %arg6[%c4_71, %c0_72] : memref<8x64xf32, #tpu.memory_space<vmem>>, vector<1x64xf32>
    tpu.vector_store %arg6[%c4_71, %c0_72], %152 {strides = array<i32>} : memref<8x64xf32, #tpu.memory_space<vmem>>, vector<1x64xf32>,
    %154 = arith.index_cast %128 : i32 to index
    %c0_73 = arith.constant 0 : index
    %155 = memref.load %arg2[%154, %c0_73] : memref<24x1xi32, #tpu.memory_space<smem>>
    %156 = arith.index_cast %155 : i32 to index
    %c0_74 = arith.constant 0 : index
    %157 = vector.load %arg4[%156, %c0_74] : memref<256x64xf32, #tpu.memory_space<vmem>>, vector<1x64xf32>
    %c4_75 = arith.constant 4 : index
    %c0_76 = arith.constant 0 : index
    %158 = vector.load %arg7[%c4_75, %c0_76] : memref<8x64xf32, #tpu.memory_space<vmem>>, vector<1x64xf32>
    tpu.vector_store %arg7[%c4_75, %c0_76], %157 {strides = array<i32>} : memref<8x64xf32, #tpu.memory_space<vmem>>, vector<1x64xf32>,
    %c5_i32 = arith.constant 5 : i32
    %159 = arith.addi %0, %c5_i32 : i32
    %160 = arith.index_cast %159 : i32 to index
    %c0_77 = arith.constant 0 : index
    %161 = memref.load %arg1[%160, %c0_77] : memref<24x5xi32, #tpu.memory_space<smem>>
    %162 = arith.index_cast %161 : i32 to index
    %c0_78 = arith.constant 0 : index
    %163 = vector.load %arg3[%162, %c0_78] : memref<256x64xf32, #tpu.memory_space<vmem>>, vector<1x64xf32>
    %164 = arith.index_cast %159 : i32 to index
    %c1_79 = arith.constant 1 : index
    %165 = memref.load %arg1[%164, %c1_79] : memref<24x5xi32, #tpu.memory_space<smem>>
    %166 = arith.index_cast %165 : i32 to index
    %c0_80 = arith.constant 0 : index
    %167 = vector.load %arg3[%166, %c0_80] : memref<256x64xf32, #tpu.memory_space<vmem>>, vector<1x64xf32>
    %168 = arith.addf %163, %167 : vector<1x64xf32>
    %169 = arith.index_cast %159 : i32 to index
    %c2_81 = arith.constant 2 : index
    %170 = memref.load %arg1[%169, %c2_81] : memref<24x5xi32, #tpu.memory_space<smem>>
    %171 = arith.index_cast %170 : i32 to index
    %c0_82 = arith.constant 0 : index
    %172 = vector.load %arg3[%171, %c0_82] : memref<256x64xf32, #tpu.memory_space<vmem>>, vector<1x64xf32>
    %173 = arith.addf %168, %172 : vector<1x64xf32>
    %174 = arith.index_cast %159 : i32 to index
    %c3_83 = arith.constant 3 : index
    %175 = memref.load %arg1[%174, %c3_83] : memref<24x5xi32, #tpu.memory_space<smem>>
    %176 = arith.index_cast %175 : i32 to index
    %c0_84 = arith.constant 0 : index
    %177 = vector.load %arg3[%176, %c0_84] : memref<256x64xf32, #tpu.memory_space<vmem>>, vector<1x64xf32>
    %178 = arith.addf %173, %177 : vector<1x64xf32>
    %179 = arith.index_cast %159 : i32 to index
    %c4_85 = arith.constant 4 : index
    %180 = memref.load %arg1[%179, %c4_85] : memref<24x5xi32, #tpu.memory_space<smem>>
    %181 = arith.index_cast %180 : i32 to index
    %c0_86 = arith.constant 0 : index
    %182 = vector.load %arg3[%181, %c0_86] : memref<256x64xf32, #tpu.memory_space<vmem>>, vector<1x64xf32>
    %183 = arith.addf %178, %182 : vector<1x64xf32>
    %c5 = arith.constant 5 : index
    %c0_87 = arith.constant 0 : index
    %184 = vector.load %arg6[%c5, %c0_87] : memref<8x64xf32, #tpu.memory_space<vmem>>, vector<1x64xf32>
    tpu.vector_store %arg6[%c5, %c0_87], %183 {strides = array<i32>} : memref<8x64xf32, #tpu.memory_space<vmem>>, vector<1x64xf32>,
    %185 = arith.index_cast %159 : i32 to index
    %c0_88 = arith.constant 0 : index
    %186 = memref.load %arg2[%185, %c0_88] : memref<24x1xi32, #tpu.memory_space<smem>>
    %187 = arith.index_cast %186 : i32 to index
    %c0_89 = arith.constant 0 : index
    %188 = vector.load %arg4[%187, %c0_89] : memref<256x64xf32, #tpu.memory_space<vmem>>, vector<1x64xf32>
    %c5_90 = arith.constant 5 : index
    %c0_91 = arith.constant 0 : index
    %189 = vector.load %arg7[%c5_90, %c0_91] : memref<8x64xf32, #tpu.memory_space<vmem>>, vector<1x64xf32>
    tpu.vector_store %arg7[%c5_90, %c0_91], %188 {strides = array<i32>} : memref<8x64xf32, #tpu.memory_space<vmem>>, vector<1x64xf32>,
    %c6_i32 = arith.constant 6 : i32
    %190 = arith.addi %0, %c6_i32 : i32
    %191 = arith.index_cast %190 : i32 to index
    %c0_92 = arith.constant 0 : index
    %192 = memref.load %arg1[%191, %c0_92] : memref<24x5xi32, #tpu.memory_space<smem>>
    %193 = arith.index_cast %192 : i32 to index
    %c0_93 = arith.constant 0 : index
    %194 = vector.load %arg3[%193, %c0_93] : memref<256x64xf32, #tpu.memory_space<vmem>>, vector<1x64xf32>
    %195 = arith.index_cast %190 : i32 to index
    %c1_94 = arith.constant 1 : index
    %196 = memref.load %arg1[%195, %c1_94] : memref<24x5xi32, #tpu.memory_space<smem>>
    %197 = arith.index_cast %196 : i32 to index
    %c0_95 = arith.constant 0 : index
    %198 = vector.load %arg3[%197, %c0_95] : memref<256x64xf32, #tpu.memory_space<vmem>>, vector<1x64xf32>
    %199 = arith.addf %194, %198 : vector<1x64xf32>
    %200 = arith.index_cast %190 : i32 to index
    %c2_96 = arith.constant 2 : index
    %201 = memref.load %arg1[%200, %c2_96] : memref<24x5xi32, #tpu.memory_space<smem>>
    %202 = arith.index_cast %201 : i32 to index
    %c0_97 = arith.constant 0 : index
    %203 = vector.load %arg3[%202, %c0_97] : memref<256x64xf32, #tpu.memory_space<vmem>>, vector<1x64xf32>
    %204 = arith.addf %199, %203 : vector<1x64xf32>
    %205 = arith.index_cast %190 : i32 to index
    %c3_98 = arith.constant 3 : index
    %206 = memref.load %arg1[%205, %c3_98] : memref<24x5xi32, #tpu.memory_space<smem>>
    %207 = arith.index_cast %206 : i32 to index
    %c0_99 = arith.constant 0 : index
    %208 = vector.load %arg3[%207, %c0_99] : memref<256x64xf32, #tpu.memory_space<vmem>>, vector<1x64xf32>
    %209 = arith.addf %204, %208 : vector<1x64xf32>
    %210 = arith.index_cast %190 : i32 to index
    %c4_100 = arith.constant 4 : index
    %211 = memref.load %arg1[%210, %c4_100] : memref<24x5xi32, #tpu.memory_space<smem>>
    %212 = arith.index_cast %211 : i32 to index
    %c0_101 = arith.constant 0 : index
    %213 = vector.load %arg3[%212, %c0_101] : memref<256x64xf32, #tpu.memory_space<vmem>>, vector<1x64xf32>
    %214 = arith.addf %209, %213 : vector<1x64xf32>
    %c6 = arith.constant 6 : index
    %c0_102 = arith.constant 0 : index
    %215 = vector.load %arg6[%c6, %c0_102] : memref<8x64xf32, #tpu.memory_space<vmem>>, vector<1x64xf32>
    tpu.vector_store %arg6[%c6, %c0_102], %214 {strides = array<i32>} : memref<8x64xf32, #tpu.memory_space<vmem>>, vector<1x64xf32>,
    %216 = arith.index_cast %190 : i32 to index
    %c0_103 = arith.constant 0 : index
    %217 = memref.load %arg2[%216, %c0_103] : memref<24x1xi32, #tpu.memory_space<smem>>
    %218 = arith.index_cast %217 : i32 to index
    %c0_104 = arith.constant 0 : index
    %219 = vector.load %arg4[%218, %c0_104] : memref<256x64xf32, #tpu.memory_space<vmem>>, vector<1x64xf32>
    %c6_105 = arith.constant 6 : index
    %c0_106 = arith.constant 0 : index
    %220 = vector.load %arg7[%c6_105, %c0_106] : memref<8x64xf32, #tpu.memory_space<vmem>>, vector<1x64xf32>
    tpu.vector_store %arg7[%c6_105, %c0_106], %219 {strides = array<i32>} : memref<8x64xf32, #tpu.memory_space<vmem>>, vector<1x64xf32>,
    %c7_i32 = arith.constant 7 : i32
    %221 = arith.addi %0, %c7_i32 : i32
    %222 = arith.index_cast %221 : i32 to index
    %c0_107 = arith.constant 0 : index
    %223 = memref.load %arg1[%222, %c0_107] : memref<24x5xi32, #tpu.memory_space<smem>>
    %224 = arith.index_cast %223 : i32 to index
    %c0_108 = arith.constant 0 : index
    %225 = vector.load %arg3[%224, %c0_108] : memref<256x64xf32, #tpu.memory_space<vmem>>, vector<1x64xf32>
    %226 = arith.index_cast %221 : i32 to index
    %c1_109 = arith.constant 1 : index
    %227 = memref.load %arg1[%226, %c1_109] : memref<24x5xi32, #tpu.memory_space<smem>>
    %228 = arith.index_cast %227 : i32 to index
    %c0_110 = arith.constant 0 : index
    %229 = vector.load %arg3[%228, %c0_110] : memref<256x64xf32, #tpu.memory_space<vmem>>, vector<1x64xf32>
    %230 = arith.addf %225, %229 : vector<1x64xf32>
    %231 = arith.index_cast %221 : i32 to index
    %c2_111 = arith.constant 2 : index
    %232 = memref.load %arg1[%231, %c2_111] : memref<24x5xi32, #tpu.memory_space<smem>>
    %233 = arith.index_cast %232 : i32 to index
    %c0_112 = arith.constant 0 : index
    %234 = vector.load %arg3[%233, %c0_112] : memref<256x64xf32, #tpu.memory_space<vmem>>, vector<1x64xf32>
    %235 = arith.addf %230, %234 : vector<1x64xf32>
    %236 = arith.index_cast %221 : i32 to index
    %c3_113 = arith.constant 3 : index
    %237 = memref.load %arg1[%236, %c3_113] : memref<24x5xi32, #tpu.memory_space<smem>>
    %238 = arith.index_cast %237 : i32 to index
    %c0_114 = arith.constant 0 : index
    %239 = vector.load %arg3[%238, %c0_114] : memref<256x64xf32, #tpu.memory_space<vmem>>, vector<1x64xf32>
    %240 = arith.addf %235, %239 : vector<1x64xf32>
    %241 = arith.index_cast %221 : i32 to index
    %c4_115 = arith.constant 4 : index
    %242 = memref.load %arg1[%241, %c4_115] : memref<24x5xi32, #tpu.memory_space<smem>>
    %243 = arith.index_cast %242 : i32 to index
    %c0_116 = arith.constant 0 : index
    %244 = vector.load %arg3[%243, %c0_116] : memref<256x64xf32, #tpu.memory_space<vmem>>, vector<1x64xf32>
    %245 = arith.addf %240, %244 : vector<1x64xf32>
    %c7 = arith.constant 7 : index
    %c0_117 = arith.constant 0 : index
    %246 = vector.load %arg6[%c7, %c0_117] : memref<8x64xf32, #tpu.memory_space<vmem>>, vector<1x64xf32>
    tpu.vector_store %arg6[%c7, %c0_117], %245 {strides = array<i32>} : memref<8x64xf32, #tpu.memory_space<vmem>>, vector<1x64xf32>,
    %247 = arith.index_cast %221 : i32 to index
    %c0_118 = arith.constant 0 : index
    %248 = memref.load %arg2[%247, %c0_118] : memref<24x1xi32, #tpu.memory_space<smem>>
    %249 = arith.index_cast %248 : i32 to index
    %c0_119 = arith.constant 0 : index
    %250 = vector.load %arg4[%249, %c0_119] : memref<256x64xf32, #tpu.memory_space<vmem>>, vector<1x64xf32>
    %c7_120 = arith.constant 7 : index
    %c0_121 = arith.constant 0 : index
    %251 = vector.load %arg7[%c7_120, %c0_121] : memref<8x64xf32, #tpu.memory_space<vmem>>, vector<1x64xf32>
    tpu.vector_store %arg7[%c7_120, %c0_121], %250 {strides = array<i32>} : memref<8x64xf32, #tpu.memory_space<vmem>>, vector<1x64xf32>,
    %c0_122 = arith.constant 0 : index
    %c0_123 = arith.constant 0 : index
    %252 = vector.load %arg6[%c0_122, %c0_123] : memref<8x64xf32, #tpu.memory_space<vmem>>, vector<8x64xf32>
    %c0_124 = arith.constant 0 : index
    %c0_125 = arith.constant 0 : index
    %253 = vector.load %arg7[%c0_124, %c0_125] : memref<8x64xf32, #tpu.memory_space<vmem>>, vector<8x64xf32>
    %254 = arith.mulf %252, %253 : vector<8x64xf32>
    %cst = arith.constant dense<0.000000e+00> : vector<8xf32>
    %255 = vector.multi_reduction <add>, %254, %cst [1] : vector<8x64xf32> to vector<8xf32>
    %256 = vector.shape_cast %255 : vector<8xf32> to vector<8x1xf32>
    %cst_126 = arith.constant 2.500000e-01 : f32
    %257 = vector.broadcast %cst_126 : f32 to vector<8x1xf32>
    %258 = arith.mulf %256, %257 : vector<8x1xf32>
    %259 = tpu.iota {dimensions = array<i32: 0>} : vector<8x1xi32>
    %260 = vector.broadcast %0 : i32 to vector<8x1xi32>
    %261 = arith.addi %260, %259 : vector<8x1xi32>
    %c8_i32_127 = arith.constant 8 : i32
    %262 = vector.broadcast %c8_i32_127 : i32 to vector<8x1xi32>
    %263 = arith.cmpi slt, %261, %262 : vector<8x1xi32>
    %cst_128 = arith.constant 1.000000e+00 : f32
    %cst_129 = arith.constant -1.000000e+00 : f32
    %264 = vector.broadcast %cst_128 : f32 to vector<8x1xf32>
    %265 = vector.broadcast %cst_129 : f32 to vector<8x1xf32>
    %266 = arith.select %263, %264, %265 : vector<8x1xi1>, vector<8x1xf32>
    %c20_i32 = arith.constant 20 : i32
    %267 = vector.broadcast %c20_i32 : i32 to vector<8x1xi32>
    %268 = arith.cmpi slt, %261, %267 : vector<8x1xi32>
    %269 = arith.extui %268 : vector<8x1xi1> to vector<8x1xi32>
    %270 = arith.sitofp %269 : vector<8x1xi32> to vector<8x1xf32>
    %c0_130 = arith.constant 0 : index
    %c0_131 = arith.constant 0 : index
    %271 = vector.load %arg8[%c0_130, %c0_131] : memref<1x1xf32, #tpu.memory_space<vmem>>, vector<1x1xf32>
    %272 = arith.mulf %266, %258 : vector<8x1xf32>
    %cst_132 = arith.constant 0.000000e+00 : f32
    %273 = vector.broadcast %cst_132 : f32 to vector<8x1xf32>
    %274 = arith.minimumf %272, %273 : vector<8x1xf32>
    %275 = math.absf %272 : vector<8x1xf32>
    %cst_133 = arith.constant 0.000000e+00 : f32
    %276 = vector.broadcast %cst_133 : f32 to vector<8x1xf32>
    %277 = arith.subf %276, %275 : vector<8x1xf32>
    %278 = math.exp %277 : vector<8x1xf32>
    %cst_134 = arith.constant 1.000000e+00 : f32
    %279 = vector.broadcast %cst_134 : f32 to vector<8x1xf32>
    %280 = arith.addf %279, %278 : vector<8x1xf32>
    %281 = math.log %280 : vector<8x1xf32>
    %282 = arith.subf %274, %281 : vector<8x1xf32>
    %283 = arith.mulf %270, %282 : vector<8x1xf32>
    %cst_135 = arith.constant dense<0.000000e+00> : vector<1xf32>
    %284 = vector.multi_reduction <add>, %283, %cst_135 [0] : vector<8x1xf32> to vector<1xf32>
    %285 = vector.shape_cast %284 : vector<1xf32> to vector<1x1xf32>
    %286 = arith.addf %271, %285 : vector<1x1xf32>
    %c0_136 = arith.constant 0 : index
    %c0_137 = arith.constant 0 : index
    %287 = vector.load %arg8[%c0_136, %c0_137] : memref<1x1xf32, #tpu.memory_space<vmem>>, vector<1x1xf32>
    tpu.vector_store %arg8[%c0_136, %c0_137], %286 {strides = array<i32>} : memref<1x1xf32, #tpu.memory_space<vmem>>, vector<1x1xf32>,
    %c2_i32_138 = arith.constant 2 : i32
    %288 = arith.cmpi eq, %arg0, %c2_i32_138 : i32
    %289 = arith.extui %288 : i1 to i32
    %c0_i32_139 = arith.constant 0 : i32
    %290 = arith.cmpi ne, %289, %c0_i32_139 : i32
    scf.if %290 {
      %c0_140 = arith.constant 0 : index
      %c0_141 = arith.constant 0 : index
      %291 = vector.load %arg8[%c0_140, %c0_141] : memref<1x1xf32, #tpu.memory_space<vmem>>, vector<1x1xf32>
      %cst_142 = arith.constant 0.000000e+00 : f32
      %292 = vector.broadcast %cst_142 : f32 to vector<1x1xf32>
      %293 = arith.subf %292, %291 : vector<1x1xf32>
      %cst_143 = arith.constant 1.250000e-01 : f32
      %294 = vector.broadcast %cst_143 : f32 to vector<1x1xf32>
      %295 = arith.mulf %293, %294 : vector<1x1xf32>
      %c0_144 = arith.constant 0 : index
      %c0_145 = arith.constant 0 : index
      %296 = vector.load %arg5[%c0_144, %c0_145] : memref<1x1xf32, #tpu.memory_space<vmem>>, vector<1x1xf32>
      tpu.vector_store %arg5[%c0_144, %c0_145], %295 {strides = array<i32>} : memref<1x1xf32, #tpu.memory_space<vmem>>, vector<1x1xf32>,
    } else {
    }
    return
  }
  func.func @transform_0(%arg0: i32, %arg1: memref<24x5xi32, #tpu.memory_space<smem>>, %arg2: memref<24x1xi32, #tpu.memory_space<smem>>) -> (i32, i32) {
    %c0_i32 = arith.constant 0 : i32
    %c0_i32_0 = arith.constant 0 : i32
    %c0_i32_1 = arith.constant 0 : i32
    return %c0_i32, %c0_i32_0 : i32, i32
  }
  func.func @transform_1(%arg0: i32, %arg1: memref<24x5xi32, #tpu.memory_space<smem>>, %arg2: memref<24x1xi32, #tpu.memory_space<smem>>) -> (i32, i32) {
    %c0_i32 = arith.constant 0 : i32
    %c0_i32_0 = arith.constant 0 : i32
    %c0_i32_1 = arith.constant 0 : i32
    return %c0_i32, %c0_i32_0 : i32, i32
  }
  func.func @transform_2(%arg0: i32, %arg1: memref<24x5xi32, #tpu.memory_space<smem>>, %arg2: memref<24x1xi32, #tpu.memory_space<smem>>) -> (i32, i32) {
    %c0_i32 = arith.constant 0 : i32
    %c0_i32_0 = arith.constant 0 : i32
    %c0_i32_1 = arith.constant 0 : i32
    return %c0_i32, %c0_i32_0 : i32, i32
  }
}

</mosaic_0001>

<bundles_post_ra>
// kernel: tpu_custom_call.1
= control target key start
LH: loop header
LB: loop body
LE: loop exit
PB: predicated region body
PF: predicated region fallthrough
CT: control target
= control target key end

     0   :  { %s899_s0 = inlined_call_operand.vmem [shape: s32[24,5], index: 0, kind: input, shape index: {}]   ;;  %s900_s2 = inlined_call_operand.vmem [shape: f32[256,64], index: 2, kind: input, shape index: {}]   ;;  %s901_s3 = inlined_call_operand.vmem [shape: f32[256,64], index: 3, kind: input, shape index: {}]   ;;  %s902_s4 = inlined_call_operand.hbm [shape: f32[1,1], index: 4, kind: output, shape index: {}]   ;;  %s903_s1 = inlined_call_operand.vmem [shape: s32[24,1], index: 1, kind: input, shape index: {}]  }
   0x1   :  { %s9_s17 = sshll.u32 %s899_s0, 4  ;;  %s13_s20 = sshll.u32 %s903_s1, 4  ;;  %s10_s17 = int_to_ptr.vmem [resolvable:$true] %s9_s17  ;;  %s14_s20 = int_to_ptr.vmem [resolvable:$true] %s13_s20 }
   0x2   :  { %s562_s21 = scalar_lea.vmem %s10_s17, 384  ;;  %p567_p1 = scmp.lt.s32.totalorder %s10_s17, %s10_s17 }
   0x3   :  { %p563_p0 = scmp.ne.s32.totalorder %s10_s17, %s562_s21  ;;  %p568_p2 = scmp.lt.s32.totalorder %s562_s21, %s562_s21 }
   0x5   :  { %p569_p3 = por %p568_p2, %p567_p1 }
   0x7   :  { %p570_p4 = pnand %p569_p3, %p563_p0 }
   0x9   :  { %573 = shalt.err (!%p570_p4)  }
   0xa   :  { %s624_s22 = smov [#allocation6]   ;;  %s574_s23 = scalar_lea.vmem %s14_s20, 384 }
   0xb   :  { %12 = dma.vmem_to_smem %s10_s17, 384, %s624_s22, [#allocation5] }
   0xc   :  { %p575_p5 = scmp.ne.s32.totalorder %s14_s20, %s574_s23  ;;  %p579_p6 = scmp.lt.s32.totalorder %s14_s20, %s14_s20 }
   0xd   :  { %p580_p7 = scmp.lt.s32.totalorder %s574_s23, %s574_s23 }
   0xf   :  { %p581_p8 = por %p580_p7, %p579_p6 }
  0x11   :  { %p582_p9 = pnand %p581_p8, %p575_p5 }
  0x13   :  { %585 = shalt.err (!%p582_p9)  }
  0x14   :  { %s625_s0 = smov [#allocation7]  }
  0x15   :  { %16 = dma.vmem_to_smem %s14_s20, 384, %s625_s0, [#allocation5] }
  0x16   :  { %614 = dma.done.wait [#allocation5], 768 }
  0x17   :  { %615 = vsyncadd [#allocation5], 4294966528 }
  0x18   :  { %18 = sfence }
  0x19   :  { %19 = vsyncpa [#allocation9], 0  ;;  %s661_s1 = smov 0  }
  0x1a LB: > { %s667_s24 = sadd.s32 4294967295, %s622_s1   ;;  %p499_p10 = scmp.ge.s32.totalorder %s622_s1, 1  ;;  %s622_s1 = sphi %s661_s1, %s25_s1  }
  0x1b   : > { %p110_p11 = scmp.lt.s32.totalorder %s622_s1, 4 }
  0x1d   : > { %p111_p12 = pnand %p499_p10, %p110_p11 }
  0x1e   : > { %s500_s25 = sshll.u32 (!%p111_p12), %s667_s24, 3  ;;  %p501_p13 = scmp.ne.s32.totalorder (!%p111_p12), %s667_s24, 0 }
  0x1f   : > { %114 = sbr.rel (%p111_p12) target bundleno = 357 (0x165), region = 28 }
  0x24   : > { %126 = sbr.rel (%p501_p13) target bundleno = 43 (0x2b), region = 32 }
  0x29   : > { %vm127_vm0 = vcmask 0   ;;  %v626_v0 = vmov 0.0  }
  0x2a   : > { %128 = vst.msk [vmem:[#allocation4] sm:$0x1] %vm127_vm0, %v626_v0 }
  0x2b PF: > { %s674_s26 = sshll.u32 %s667_s24, 10  ;;  %vm153_vm1 = vcmask 516096   ;;  %vm372_vm2 = vcmask 523264   ;;  %vm405_vm5 = vcmask 0   ;;  %p511_p0 = scmp.ne.s32.totalorder %s667_s24, 2 }
  0x2c   : > { %s130_s27 = sld [smem:[#allocation6 + %s674_s26]]  ;;  %s133_s28 = sadd.s32 1, %s674_s26 }
  0x2d   : > { %s134_s29 = sld [smem:[#allocation6 + %s133_s28]]  ;;  %s138_s30 = sadd.s32 2, %s674_s26 }
  0x2e   : > { %s139_s5 = sld [smem:[#allocation6 + %s138_s30]]  ;;  %s143_s6 = sadd.s32 3, %s674_s26 }
  0x2f   : > { %s144_s7 = sld [smem:[#allocation6 + %s143_s6]]  ;;  %s148_s8 = sadd.s32 4, %s674_s26 }
  0x30   : > { %s149_s9 = sld [smem:[#allocation6 + %s148_s8]]  ;;  %s682_s10 = sadd.s32 128, %s674_s26 }
  0x31   : > { %s155_s11 = sld [smem:[#allocation7 + %s674_s26]]  ;;  %s164_s12 = sadd.s32 1, %s682_s10 }
  0x32   : > { %s131_s15 = scalar_lea.vmem %s900_s2, %s130_s27  ;;  %s161_s16 = sld [smem:[#allocation6 + %s682_s10]] }
  0x33   : > { %v132_v1 = vld [vmem:[%s131_s15] sm:$0x1]  ;;  %s135_s19 = scalar_lea.vmem %s900_s2, %s134_s29  ;;  %s165_s20 = sld [smem:[#allocation6 + %s164_s12]] }
  0x34   : > { %v136_v2 = vld [vmem:[%s135_s19] sm:$0x1]  ;;  %s140_s23 = scalar_lea.vmem %s900_s2, %s139_s5  ;;  %s169_s0 = sadd.s32 2, %s682_s10 }
  0x35   : > { %v137_v3 = vadd.f32 %v136_v2, %v132_v1  ;;  %v141_v4 = vld [vmem:[%s140_s23] sm:$0x1]  ;;  %s145_s27 = scalar_lea.vmem %s900_s2, %s144_s7  ;;  %s170_s6 = sld [smem:[#allocation6 + %s169_s0]] }
  0x36   : > { %v146_v5 = vld [vmem:[%s145_s27] sm:$0x1]  ;;  %s150_s29 = scalar_lea.vmem %s900_s2, %s149_s9  ;;  %s174_s12 = sadd.s32 3, %s682_s10 }
  0x37   : > { %v142_v6 = vadd.f32 %v141_v4, %v137_v3  ;;  %s156_s15 = scalar_lea.vmem %s901_s3, %s155_s11  ;;  %s175_s17 = sld [smem:[#allocation6 + %s174_s12]]  ;;  %v151_v7 = vld [vmem:[%s150_s29] sm:$0x1] }
  0x38   : > { %v157_v8 = vld [vmem:[%s156_s15] sm:$0x1]  ;;  %s162_s19 = scalar_lea.vmem %s900_s2, %s161_s16  ;;  %s179_s21 = sadd.s32 4, %s682_s10 }
  0x39   : > { %v147_v9 = vadd.f32 %v146_v5, %v142_v6  ;;  %158 = vst.msk [vmem:[#allocation3] sm:$0x1] %vm153_vm1, %v157_v8  ;;  %v163_v10 = vld [vmem:[%s162_s19] sm:$0x1]  ;;  %s166_s23 = scalar_lea.vmem %s900_s2, %s165_s20  ;;  %s180_s0 = sld [smem:[#allocation6 + %s179_s21]] }
  0x3a   : > { %v167_v11 = vld [vmem:[%s166_s23] sm:$0x1]  ;;  %s185_s28 = sld [smem:[#allocation7 + %s682_s10]]  ;;  %s520_s11 = sadd.s32 256, %s674_s26 }
  0x3b   : > { %v152_v12 = vadd.f32 %v151_v7, %v147_v9  ;;  %v168_v13 = vadd.f32 %v167_v11, %v163_v10  ;;  %s171_s8 = scalar_lea.vmem %s900_s2, %s170_s6  ;;  %s191_s16 = sld [smem:[#allocation6 + %s520_s11]] }
  0x3c   : > { %v172_v14 = vld [vmem:[%s171_s8] sm:$0x1]  ;;  %s194_s13 = sadd.s32 1, %s520_s11  ;;  %s199_s29 = sadd.s32 2, %s520_s11 }
  0x3d   : > { %154 = vst.msk [vmem:[#allocation2] sm:$0x1] %vm153_vm1, %v152_v12  ;;  %v173_v15 = vadd.f32 %v172_v14, %v168_v13  ;;  %s176_s20 = scalar_lea.vmem %s900_s2, %s175_s17  ;;  %s195_s14 = sld [smem:[#allocation6 + %s194_s13]] }
  0x3e   : > { %v177_v16 = vld [vmem:[%s176_s20] sm:$0x1]  ;;  %s200_s10 = sld [smem:[#allocation6 + %s199_s29]]  ;;  %s204_s15 = sadd.s32 3, %s520_s11 }
  0x3f   : > { %v178_v17 = vadd.f32 %v177_v16, %v173_v15  ;;  %s181_s6 = scalar_lea.vmem %s900_s2, %s180_s0  ;;  %s205_s19 = sld [smem:[#allocation6 + %s204_s15]] }
  0x40   : > { %v182_v18 = vld [vmem:[%s181_s6] sm:$0x1]  ;;  %s186_s22 = scalar_lea.vmem %s901_s3, %s185_s28  ;;  %s209_s23 = sadd.s32 4, %s520_s11 }
  0x41   : > { %v183_v19 = vadd.f32 %v182_v18, %v178_v17  ;;  %v187_v20 = vld [vmem:[%s186_s22] sm:$0x1]  ;;  %s192_s27 = scalar_lea.vmem %s900_s2, %s191_s16  ;;  %s210_s8 = sld [smem:[#allocation6 + %s209_s23]] }
  0x42   : > { %188 = vst.msk [vmem:[#allocation3 + $0x1] sm:$0x1] %vm153_vm1, %v187_v20  ;;  %v193_v21 = vld [vmem:[%s192_s27] sm:$0x1]  ;;  %s215_s13 = sld [smem:[#allocation7 + %s520_s11]]  ;;  %s735_s29 = sadd.s32 384, %s674_s26 }
  0x43   : > { %184 = vst.msk [vmem:[#allocation2 + $0x1] sm:$0x1] %vm153_vm1, %v183_v19  ;;  %s196_s12 = scalar_lea.vmem %s900_s2, %s195_s14  ;;  %s221_s5 = sld [smem:[#allocation6 + %s735_s29]] }
  0x44   : > { %v197_v22 = vld [vmem:[%s196_s12] sm:$0x1]  ;;  %s201_s15 = scalar_lea.vmem %s900_s2, %s200_s10  ;;  %s224_s18 = sadd.s32 1, %s735_s29 }
  0x45   : > { %v198_v23 = vadd.f32 %v197_v22, %v193_v21  ;;  %v202_v24 = vld [vmem:[%s201_s15] sm:$0x1]  ;;  %s206_s6 = scalar_lea.vmem %s900_s2, %s205_s19  ;;  %s225_s21 = sld [smem:[#allocation6 + %s224_s18]]  ;;  %v377_v21 = vlaneseq }
  0x46   : > { %v207_v25 = vld [vmem:[%s206_s6] sm:$0x1]  ;;  %s229_s9 = sadd.s32 2, %s735_s29  ;;  %s234_s22 = sadd.s32 3, %s735_s29 }
  0x47   : > { %v203_v26 = vadd.f32 %v202_v24, %v198_v23  ;;  %s211_s17 = scalar_lea.vmem %s900_s2, %s210_s8  ;;  %s230_s10 = sld [smem:[#allocation6 + %s229_s9]]  ;;  %v378_v22 = vshrl.u32 %v377_v21, 7  ;;  %v379_v23 = vstv %s500_s25 }
  0x48   : > { %v212_v27 = vld [vmem:[%s211_s17] sm:$0x1]  ;;  %s216_s0 = scalar_lea.vmem %s901_s3, %s215_s13  ;;  %s235_s28 = sld [smem:[#allocation6 + %s234_s22]] }
  0x49   : > { %v208_v28 = vadd.f32 %v207_v25, %v203_v26  ;;  %v217_v29 = vld [vmem:[%s216_s0] sm:$0x1]  ;;  %s222_s16 = scalar_lea.vmem %s900_s2, %s221_s5  ;;  %s239_s20 = sadd.s32 4, %s735_s29  ;;  %v380_v24 = vadd.s32 %v379_v23, %v378_v22  ;;  %v627_v26 = vmov -1.0  }
  0x4a   : > { %218 = vst.msk [vmem:[#allocation3 + $0x2] sm:$0x1] %vm153_vm1, %v217_v29  ;;  %v223_v30 = vld [vmem:[%s222_s16] sm:$0x1]  ;;  %s240_s15 = sld [smem:[#allocation6 + %s239_s20]]  ;;  %s763_s18 = sadd.s32 512, %s674_s26 }
  0x4b   : > { %v213_v31 = vadd.f32 %v212_v27, %v208_v28  ;;  %s226_s11 = scalar_lea.vmem %s900_s2, %s225_s21  ;;  %s245_s7 = sld [smem:[#allocation7 + %s735_s29]]  ;;  %vm381_vm3 = vcmp.lt.s32.totalorder %v380_v24, 8  ;;  %vm383_vm4 = vcmp.lt.s32.totalorder %v380_v24, 20 }
  0x4c   : > { %v227_v32 = vld [vmem:[%s226_s11] sm:$0x1]  ;;  %s251_s6 = sld [smem:[#allocation6 + %s763_s18]]  ;;  %s254_s5 = sadd.s32 1, %s763_s18  ;;  %v382_v27 = vsel %vm381_vm3, 1.0, %v627_v26 }
  0x4d   : > { %214 = vst.msk [vmem:[#allocation2 + $0x2] sm:$0x1] %vm153_vm1, %v213_v31  ;;  %v228_v33 = vadd.f32 %v227_v32, %v223_v30  ;;  %s231_s14 = scalar_lea.vmem %s900_s2, %s230_s10  ;;  %s255_s23 = sld [smem:[#allocation6 + %s254_s5]] }
  0x4e   : > { %v232_v34 = vld [vmem:[%s231_s14] sm:$0x1]  ;;  %s236_s27 = scalar_lea.vmem %s900_s2, %s235_s28  ;;  %s259_s0 = sadd.s32 2, %s763_s18 }
  0x4f   : > { %v233_v35 = vadd.f32 %v232_v34, %v228_v33  ;;  %v237_v36 = vld [vmem:[%s236_s27] sm:$0x1]  ;;  %s260_s29 = sld [smem:[#allocation6 + %s259_s0]]  ;;  %s264_s21 = sadd.s32 3, %s763_s18 }
  0x50   : > { %s241_s16 = scalar_lea.vmem %s900_s2, %s240_s15  ;;  %s265_s20 = sld [smem:[#allocation6 + %s264_s21]] }
  0x51   : > { %v238_v37 = vadd.f32 %v237_v36, %v233_v35  ;;  %v242_v38 = vld [vmem:[%s241_s16] sm:$0x1]  ;;  %s246_s13 = scalar_lea.vmem %s901_s3, %s245_s7  ;;  %s269_s28 = sadd.s32 4, %s763_s18 }
  0x52   : > { %v247_v39 = vld [vmem:[%s246_s13] sm:$0x1]  ;;  %s252_s9 = scalar_lea.vmem %s900_s2, %s251_s6  ;;  %s270_s22 = sld [smem:[#allocation6 + %s269_s28]] }
  0x53   : > { %v243_v40 = vadd.f32 %v242_v38, %v238_v37  ;;  %248 = vst.msk [vmem:[#allocation3 + $0x3] sm:$0x1] %vm153_vm1, %v247_v39  ;;  %v253_v41 = vld [vmem:[%s252_s9] sm:$0x1]  ;;  %s256_s17 = scalar_lea.vmem %s900_s2, %s255_s23  ;;  %s275_s30 = sld [smem:[#allocation7 + %s763_s18]]  ;;  %v628_v38 = vmov 0.0  }
  0x54   : > { %v257_v42 = vld [vmem:[%s256_s17] sm:$0x1]  ;;  %s526_s27 = sadd.s32 640, %s674_s26  ;;  %s797_s0 = sadd.s32 768, %s674_s26  ;;  %v510_v39 = vsel %vm383_vm4, 1.0, %v628_v38 }
  0x55   : > { %244 = vst.msk [vmem:[#allocation2 + $0x3] sm:$0x1] %vm153_vm1, %v243_v40  ;;  %v258_v43 = vadd.f32 %v257_v42, %v253_v41  ;;  %s261_s6 = scalar_lea.vmem %s900_s2, %s260_s29  ;;  %s281_s19 = sld [smem:[#allocation6 + %s526_s27]] }
  0x56   : > { %v262_v44 = vld [vmem:[%s261_s6] sm:$0x1]  ;;  %s266_s10 = scalar_lea.vmem %s900_s2, %s265_s20  ;;  %s284_s8 = sadd.s32 1, %s526_s27 }
  0x57   : > { %v263_v45 = vadd.f32 %v262_v44, %v258_v43  ;;  %v267_v46 = vld [vmem:[%s266_s10] sm:$0x1]  ;;  %s285_s18 = sld [smem:[#allocation6 + %s284_s8]]  ;;  %s289_s23 = sadd.s32 2, %s526_s27 }
  0x58   : > { %s271_s11 = scalar_lea.vmem %s900_s2, %s270_s22  ;;  %s290_s5 = sld [smem:[#allocation6 + %s289_s23]] }
  0x59   : > { %v268_v47 = vadd.f32 %v267_v46, %v263_v45  ;;  %v272_v48 = vld [vmem:[%s271_s11] sm:$0x1]  ;;  %s276_s15 = scalar_lea.vmem %s901_s3, %s275_s30  ;;  %s294_s14 = sadd.s32 3, %s526_s27 }
  0x5a   : > { %v277_v49 = vld [vmem:[%s276_s15] sm:$0x1]  ;;  %s295_s20 = sld [smem:[#allocation6 + %s294_s14]]  ;;  %s299_s17 = sadd.s32 4, %s526_s27 }
  0x5b   : > { %v273_v50 = vadd.f32 %v272_v48, %v268_v47  ;;  %278 = vst.msk [vmem:[#allocation3 + $0x4] sm:$0x1] %vm153_vm1, %v277_v49  ;;  %s282_s22 = scalar_lea.vmem %s900_s2, %s281_s19  ;;  %s300_s6 = sld [smem:[#allocation6 + %s299_s17]]  ;;  %v386_v47 = vld [vmem:[#allocation4] sm:$0x1] }
  0x5c   : > { %v283_v51 = vld [vmem:[%s282_s22] sm:$0x1]  ;;  %s305_s12 = sld [smem:[#allocation7 + %s526_s27]]  ;;  %s314_s16 = sadd.s32 1, %s797_s0 }
  0x5d   : > { %274 = vst.msk [vmem:[#allocation2 + $0x4] sm:$0x1] %vm153_vm1, %v273_v50  ;;  %s286_s8 = scalar_lea.vmem %s900_s2, %s285_s18  ;;  %s311_s23 = sld [smem:[#allocation6 + %s797_s0]] }
  0x5e   : > { %v287_v52 = vld [vmem:[%s286_s8] sm:$0x1]  ;;  %s291_s11 = scalar_lea.vmem %s900_s2, %s290_s5  ;;  %s315_s29 = sld [smem:[#allocation6 + %s314_s16]] }
  0x5f   : > { %v288_v53 = vadd.f32 %v287_v52, %v283_v51  ;;  %v292_v54 = vld [vmem:[%s291_s11] sm:$0x1]  ;;  %s319_s19 = sadd.s32 2, %s797_s0  ;;  %s324_s9 = sadd.s32 3, %s797_s0 }
  0x60   : > { %s296_s14 = scalar_lea.vmem %s900_s2, %s295_s20  ;;  %s320_s17 = sld [smem:[#allocation6 + %s319_s19]] }
  0x61   : > { %v293_v55 = vadd.f32 %v292_v54, %v288_v53  ;;  %v297_v56 = vld [vmem:[%s296_s14] sm:$0x1]  ;;  %s301_s21 = scalar_lea.vmem %s900_s2, %s300_s6  ;;  %s325_s22 = sld [smem:[#allocation6 + %s324_s9]] }
  0x62   : > { %v302_v57 = vld [vmem:[%s301_s21] sm:$0x1]  ;;  %s306_s30 = scalar_lea.vmem %s901_s3, %s305_s12  ;;  %s329_s10 = sadd.s32 4, %s797_s0 }
  0x63   : > { %v298_v58 = vadd.f32 %v297_v56, %v293_v55  ;;  %v307_v59 = vld [vmem:[%s306_s30] sm:$0x1]  ;;  %s312_s13 = scalar_lea.vmem %s900_s2, %s311_s23  ;;  %s330_s28 = sld [smem:[#allocation6 + %s329_s10]] }
  0x64   : > { %308 = vst.msk [vmem:[#allocation3 + $0x5] sm:$0x1] %vm153_vm1, %v307_v59  ;;  %v313_v60 = vld [vmem:[%s312_s13] sm:$0x1]  ;;  %s316_s6 = scalar_lea.vmem %s900_s2, %s315_s29  ;;  %s335_s9 = sld [smem:[#allocation7 + %s797_s0]] }
  0x65   : > { %v303_v61 = vadd.f32 %v302_v57, %v298_v58  ;;  %v317_v62 = vld [vmem:[%s316_s6] sm:$0x1]  ;;  %s530_s27 = sadd.s32 896, %s674_s26 }
  0x66   : > { %v318_v63 = vadd.f32 %v317_v62, %v313_v60  ;;  %s321_s14 = scalar_lea.vmem %s900_s2, %s320_s17  ;;  %s341_s18 = sld [smem:[#allocation6 + %s530_s27]] }
  0x67   : > { %304 = vst.msk [vmem:[#allocation2 + $0x5] sm:$0x1] %vm153_vm1, %v303_v61  ;;  %v322_v0 = vld [vmem:[%s321_s14] sm:$0x1]  ;;  %s326_s21 = scalar_lea.vmem %s900_s2, %s325_s22  ;;  %s344_s5 = sadd.s32 1, %s530_s27 }
  0x68   : > { %v323_v1 = vadd.f32 %v322_v0, %v318_v63  ;;  %v327_v2 = vld [vmem:[%s326_s21] sm:$0x1]  ;;  %s345_s0 = sld [smem:[#allocation6 + %s344_s5]]  ;;  %s349_s29 = sadd.s32 2, %s530_s27 }
  0x69   : > { %s331_s30 = scalar_lea.vmem %s900_s2, %s330_s28  ;;  %s350_s10 = sld [smem:[#allocation6 + %s349_s29]] }
  0x6a   : > { %v328_v3 = vadd.f32 %v327_v2, %v323_v1  ;;  %v332_v4 = vld [vmem:[%s331_s30] sm:$0x1]  ;;  %s336_s20 = scalar_lea.vmem %s901_s3, %s335_s9  ;;  %s354_s13 = sadd.s32 3, %s530_s27 }
  0x6b   : > { %v337_v5 = vld [vmem:[%s336_s20] sm:$0x1]  ;;  %s355_s11 = sld [smem:[#allocation6 + %s354_s13]]  ;;  %s359_s22 = sadd.s32 4, %s530_s27 }
  0x6c   : > { %v333_v6 = vadd.f32 %v332_v4, %v328_v3  ;;  %338 = vst.msk [vmem:[#allocation3 + $0x6] sm:$0x1] %vm153_vm1, %v337_v5  ;;  %s342_s12 = scalar_lea.vmem %s900_s2, %s341_s18  ;;  %s360_s15 = sld [smem:[#allocation6 + %s359_s22]] }
  0x6d   : > { %v343_v7 = vld [vmem:[%s342_s12] sm:$0x1]  ;;  %s365_s28 = sld [smem:[#allocation7 + %s530_s27]] }
  0x6e   : > { %334 = vst.msk [vmem:[#allocation2 + $0x6] sm:$0x1] %vm153_vm1, %v333_v6  ;;  %s346_s9 = scalar_lea.vmem %s900_s2, %s345_s0 }
  0x6f   : > { %v347_v8 = vld [vmem:[%s346_s9] sm:$0x1]  ;;  %s351_s5 = scalar_lea.vmem %s900_s2, %s350_s10 }
  0x70   : > { %v348_v9 = vadd.f32 %v347_v8, %v343_v7  ;;  %v352_v10 = vld [vmem:[%s351_s5] sm:$0x1] }
  0x71   : > { %s356_s18 = scalar_lea.vmem %s900_s2, %s355_s11 }
  0x72   : > { %v353_v11 = vadd.f32 %v352_v10, %v348_v9  ;;  %v357_v12 = vld [vmem:[%s356_s18] sm:$0x1]  ;;  %s361_s30 = scalar_lea.vmem %s900_s2, %s360_s15 }
  0x73   : > { %v362_v13 = vld [vmem:[%s361_s30] sm:$0x1]  ;;  %s366_s8 = scalar_lea.vmem %s901_s3, %s365_s28 }
  0x74   : > { %v358_v14 = vadd.f32 %v357_v12, %v353_v11  ;;  %v367_v15 = vld [vmem:[%s366_s8] sm:$0x1] }
  0x75   : > { %368 = vst.msk [vmem:[#allocation3 + $0x7] sm:$0x1] %vm153_vm1, %v367_v15 }
  0x76   : > { %v363_v16 = vadd.f32 %v362_v13, %v358_v14 }
  0x78   : > { %364 = vst.msk [vmem:[#allocation2 + $0x7] sm:$0x1] %vm153_vm1, %v363_v16 }
  0x7c   : > { %v370_v17 = vld [vmem:[#allocation3] sm:$0xff] }
  0x7f   : > { %v369_v18 = vld [vmem:[#allocation2] sm:$0xff] }
  0x80   : > { %v371_v19 = vmul.f32 %v370_v17, %v369_v18 }
  0x82   : > { %v373_v20 = vsel %vm372_vm2, %v371_v19, 0.0 }
  0x83   : > { %374 = vadd.xlane.f32.xlu0 %v373_v20 }
 0x10c   : > { %v375_v25 = vpop.xlane.xlu0 %374 }
 0x10d   : > { %v376_v28 = vmul.f32 0.25, %v375_v25 }
 0x10f   : > { %v387_v29 = vmul.f32 %v382_v27, %v376_v28 }
 0x111   : > { %v389_v30 = vand.u32 2147483647, %v387_v29  ;;  %v388_v36 = vmin.f32 %v387_v29, 0.0 }
 0x113   : > { %v390_v31 = vsub.f32 0.0, %v389_v30 }
 0x115   : > { %v391_v32 = vmul.f32 1.442695, %v390_v31 }
 0x117   : > { %558 = vpow2.f32 %v391_v32 }
 0x124   : > { %v559_v33 = vpop.eup %558 }
 0x125   : > { %v393_v34 = vadd.f32 1.0, %v559_v33 }
 0x127   : > { %560 = vlog2.f32 %v393_v34 }
 0x134   : > { %v561_v35 = vpop.eup %560 }
 0x135   : > { %v395_v37 = vmul.f32 0.6931472, %v561_v35 }
 0x137   : > { %v396_v40 = vsub.f32 %v388_v36, %v395_v37 }
 0x139   : > { %v397_v41 = vmul.f32 %v510_v39, %v396_v40 }
 0x13b   : > { %v398_v42 = vrot.slane %v397_v41, 4 }
 0x13d   : > { %v399_v43 = vadd.f32 %v398_v42, %v397_v41 }
 0x13f   : > { %v400_v44 = vrot.slane %v399_v43, 2 }
 0x141   : > { %v401_v45 = vadd.f32 %v400_v44, %v399_v43 }
 0x143   : > { %v402_v46 = vrot.slane %v401_v45, 1 }
 0x145   : > { %v403_v48 = vadd.f32 %v402_v46, %v401_v45  ;;  %410 = sbr.rel (%p511_p0) target bundleno = 342 (0x156), region = 36 }
 0x147   : > { %v404_v49 = vadd.f32 %v403_v48, %v386_v47 }
 0x149   : > { %406 = vst.msk [vmem:[#allocation4] sm:$0x1] %vm405_vm5, %v404_v49 }
 0x150   : > { %v411_v50 = vld [vmem:[#allocation4] sm:$0x1] }
 0x151   : > { %v412_v51 = vsub.f32 0.0, %v411_v50 }
 0x153   : > { %v413_v52 = vmul.f32 0.125, %v412_v51 }
 0x155   : > { %414 = vst.msk [vmem:[#allocation8] sm:$0x1] %vm405_vm5, %v413_v52 }
 0x156 PF: > { %p542_p1 = scmp.eq.s32.totalorder %s667_s24, 2  ;;  %s629_s25 = smov [#allocation8]  }
 0x157   : > { %s422_s10 = sshll.u32 %s629_s25, 4  ;;  %s423_s10 = int_to_ptr.vmem [resolvable:$true] %s422_s10 }
 0x158   : > { %s586_s20 = scalar_lea.vmem %s423_s10, 16  ;;  %s592_s13 = scalar_lea.vmem %s423_s10, 32 }
 0x159   : > { %p587_p2 = scmp.ne.s32.totalorder %s423_s10, %s586_s20  ;;  %p593_p5 = scmp.lt.s32.totalorder %s423_s10, %s423_s10 }
 0x15a   : > { %p594_p6 = scmp.lt.s32.totalorder %s592_s13, %s586_s20 }
 0x15b   : > { %p588_p3 = pnand %p587_p2, %p542_p1 }
 0x15c   : > { %p595_p7 = por %p594_p6, %p593_p5 }
 0x15d   : > { %p589_p4 = pneg %p588_p3 }
 0x15f   : > { %p596_p8 = pnand %p595_p7, %p589_p4 }
 0x161   : > { %599 = shalt.err (!%p596_p8)
}
 0x162   : > { %539 = dma.vmem_to_hbm [thread:$0]  (%p542_p1), %s423_s10, 16, %s902_s4, [#allocation9]  }
 0x163   : > { %617 = dma.done.wait (%p542_p1), [#allocation9], 16  }
 0x164   : > { %619 = vsyncadd (%p542_p1), [#allocation9], 4294967280 }
 0x165 PF: > { %s25_s1 = sadd.s32 1, %s622_s1  }
 0x166   : > { %p22_p9 = scmp.ge.s32.totalorder %s25_s1, 5  }
 0x168   :  { %24 = sbr.rel (!%p22_p9) target bundleno = 26 (0x1a), region = 108 }
 0x16d   :  { %435 = vsyncpa [#allocation9], 1 }
 0x16e   :  { %437 = vsyncpa [#allocation9 + $0x1], 1 }

</bundles_post_ra>
